<compile_context>
chip_gen: v7x
topology: tpu7x:2x2x1
jax: 0.10.0
libtpu: 0.0.40
codegen_flags: <defaults>
</compile_context>

<pallas_src>
import functools

import jax
import jax.numpy as jnp
from jax import lax
from jax.experimental import pallas as pl
from jax.experimental.pallas import tpu as pltpu

EPS = 1e-5  # torch.nn.LayerNorm default


# --------------------------------------------------------------------------- #
# Kernel
# --------------------------------------------------------------------------- #
def _layernorm_kernel(x_ref, g_ref, b_ref, o_ref, *, inv_d, true_d):
    # x_ref: (tile_rows, Dp) tile, g_ref/b_ref: (1, Dp), o_ref: (tile_rows, Dp)
    x = x_ref[...].astype(jnp.float32)
    d_pad = x.shape[-1]

    # Padded lanes (if any) are zero-filled on the host, so the plain sum is
    # already the sum over the true D lanes; inv_d == 1/true_d.
    mean = jnp.sum(x, axis=-1, keepdims=True) * inv_d

    if true_d == d_pad:
        sq = (x - mean) * (x - mean)
    else:
        lane = lax.broadcasted_iota(jnp.int32, (1, d_pad), 1)
        sq = jnp.where(lane < true_d, (x - mean) * (x - mean), 0.0)
    var = jnp.sum(sq, axis=-1, keepdims=True) * inv_d  # biased, like torch

    inv = lax.rsqrt(var + EPS)
    # Recompute (x - mean) here instead of keeping a tile-sized f32 temp live
    # across the variance reduction (smaller VMEM working set).
    y = (x - mean) * inv * g_ref[...].astype(jnp.float32) + b_ref[...].astype(jnp.float32)
    o_ref[...] = y.astype(o_ref.dtype)


# --------------------------------------------------------------------------- #
# Static (host-side) configuration helpers
# --------------------------------------------------------------------------- #
def _round_up(x, m):
    return ((x + m - 1) // m) * m


def _sublane_multiple(itemsize):
    return {4: 8, 2: 16, 1: 32}.get(itemsize, 8)


def _vmem_budget_bytes():
    """Generation-aware VMEM budget: physical capacity minus ~16 MiB headroom."""
    try:
        cap = int(pltpu.get_tpu_info().vmem_capacity_bytes)
    except Exception:
        cap = 64 << 20  # conservative fallback (v7x-sized); safe on all gens
    return max(32 << 20, cap - (16 << 20))


def _f32_work_copies(itemsize):
    # Resident f32 working copies of a tile inside the kernel: the f32 view of
    # x plus ~1 fused temporary; +1 materialized upcast when x is not f32.
    return 2 if itemsize == 4 else 3


def _pick_tile_rows(n_rows, d_pad, itemsize, vmem_budget):
    """Rows per tile, sized from the VMEM budget and an ~8 MiB input target."""
    sub = _sublane_multiple(itemsize)
    row_in_bytes = d_pad * itemsize
    per_row_vmem = 4 * row_in_bytes + _f32_work_copies(itemsize) * d_pad * 4
    # Fit under the budget (double-buffered in+out tiles + f32 working set).
    rows_vmem = max(sub, (vmem_budget - (4 << 20)) // max(1, per_row_vmem))
    # ~8 MiB of input per tile amortizes the per-grid-step overhead (v7x HBM).
    rows_target = max(sub, (8 << 20) // max(1, row_in_bytes))
    rows = min(rows_vmem, rows_target, 8192)
    # Keep >=4 grid steps when N is large enough: pipelining overlap and both
    # TensorCores on v7x ("parallel" row axis).
    rows = min(rows, max(sub, _round_up(pl.cdiv(n_rows, 4), sub)))
    rows = max(sub, (rows // sub) * sub)
    # Never (much) larger than the whole row count.
    rows = min(rows, _round_up(n_rows, sub))
    return int(max(sub, rows))


# --------------------------------------------------------------------------- #
# pallas_call wrapper
# --------------------------------------------------------------------------- #
@functools.partial(jax.jit, static_argnames=("tile_rows", "vmem_limit", "true_d"))
def _layernorm_2d(x2, g2, b2, *, tile_rows, vmem_limit, true_d):
    n, d_pad = x2.shape
    grid = (pl.cdiv(n, tile_rows),)
    kernel = functools.partial(_layernorm_kernel, inv_d=1.0 / true_d, true_d=true_d)
    return pl.pallas_call(
        kernel,
        out_shape=jax.ShapeDtypeStruct((n, d_pad), x2.dtype),
        grid_spec=pltpu.PrefetchScalarGridSpec(
            num_scalar_prefetch=0,
            grid=grid,
            in_specs=[
                pl.BlockSpec((tile_rows, d_pad), lambda i: (i, 0)),
                pl.BlockSpec((1, d_pad), lambda i: (0, 0)),  # gamma: VMEM-resident
                pl.BlockSpec((1, d_pad), lambda i: (0, 0)),  # beta:  VMEM-resident
            ],
            out_specs=pl.BlockSpec((tile_rows, d_pad), lambda i: (i, 0)),
        ),
        compiler_params=pltpu.CompilerParams(
            dimension_semantics=("parallel",),
            vmem_limit_bytes=vmem_limit,
        ),
    )(x2, g2, b2)


def normalization_forward(x, gamma, beta, *, tile_rows=None):
    """LayerNorm over the last dim of x (any leading shape), Pallas TPU kernel."""
    orig_shape = x.shape
    d = orig_shape[-1]
    x2 = x.reshape(-1, d)                       # .view(-1, D)
    n = x2.shape[0]
    itemsize = jnp.dtype(x2.dtype).itemsize

    # Lane-dense feature dim: pad to a multiple of 128; padded lanes are masked
    # out of the reductions in the kernel and sliced off the output.
    d_pad = max(128, _round_up(d, 128))
    g2 = gamma.reshape(1, d)
    b2 = beta.reshape(1, d)
    if d_pad != d:
        pad = d_pad - d
        x2 = jnp.pad(x2, ((0, 0), (0, pad)))
        g2 = jnp.pad(g2, ((0, 0), (0, pad)))
        b2 = jnp.pad(b2, ((0, 0), (0, pad)))

    vmem_budget = _vmem_budget_bytes()
    if tile_rows is None:
        tile_rows = _pick_tile_rows(n, d_pad, itemsize, vmem_budget)
    tile_rows = int(tile_rows)

    # VMEM requirement for the chosen tile (actual dtype path; no phantom f32
    # copy of x when the input is already f32).  Fail loudly instead of
    # silently clamping the limit below what the tiles need.
    tile_in_bytes = tile_rows * d_pad * itemsize
    vmem_needed = (4 * tile_in_bytes                                   # 2x in + 2x out, double-buffered
                   + _f32_work_copies(itemsize) * tile_rows * d_pad * 4  # f32 working set
                   + 4 * d_pad * 4                                     # gamma/beta (f32 upcast)
                   + (2 << 20))                                        # slack
    if vmem_needed > vmem_budget:
        # TODO(synk): column-tiled (two-pass) fallback for extremely large embedding_dim.
        raise ValueError(
            f"LayerNorm tile ({tile_rows}x{d_pad}, {jnp.dtype(x2.dtype)}) needs "
            f"~{vmem_needed >> 20} MiB VMEM but the budget is {vmem_budget >> 20} MiB")
    vmem_limit = int(min(vmem_budget, max(vmem_needed, 32 << 20)))

    out = _layernorm_2d(x2, g2, b2, tile_rows=tile_rows, vmem_limit=vmem_limit,
                        true_d=int(d))
    if d_pad != d:
        out = out[:, :d]
    return out.reshape(orig_shape)              # .view(*input.size())


# --------------------------------------------------------------------------- #
# Reference + self-test
# --------------------------------------------------------------------------- #
def _reference(x, gamma, beta):
    x32 = x.astype(jnp.float32)
    mean = jnp.mean(x32, axis=-1, keepdims=True)
    var = jnp.mean((x32 - mean) ** 2, axis=-1, keepdims=True)
    return ((x32 - mean) * lax.rsqrt(var + EPS) * gamma + beta).astype(x.dtype)


if __name__ == "__main__":
    key = jax.random.PRNGKey(0)
    k_x, k_x2 = jax.random.split(key, 2)

    # Matches the module usage: (..., embedding_dim), flattened to (-1, D).
    embedding_dim = 128
    x = jax.random.normal(k_x, (2, 8, embedding_dim), dtype=jnp.float32)

    # nn.LayerNorm default parameter init: weight = 1, bias = 0 (deterministic).
    gamma = jnp.ones((embedding_dim,), jnp.float32)
    beta = jnp.zeros((embedding_dim,), jnp.float32)

    y = normalization_forward(x, gamma, beta)
    jax.block_until_ready(y)
    y_ref = _reference(x, gamma, beta)
    assert y.shape == x.shape
    assert jnp.allclose(y, y_ref, atol=1e-5, rtol=1e-5), "mismatch vs reference (D=128)"

    # Exercise the lane-padded path (embedding dim not a multiple of 128).
    d_odd = 96
    x_b = jax.random.normal(k_x2, (2, 8, d_odd), dtype=jnp.float32)
    g_b = jnp.ones((d_odd,), jnp.float32)
    b_b = jnp.zeros((d_odd,), jnp.float32)
    y_b = normalization_forward(x_b, g_b, b_b)
    jax.block_until_ready(y_b)
    assert y_b.shape == x_b.shape
    assert jnp.allclose(y_b, _reference(x_b, g_b, b_b), atol=1e-5, rtol=1e-5), \
        "mismatch vs reference (D=96, padded path)"

    print("KERNEL_OK")
</pallas_src>

<mosaic_0001>
module attributes {stable_mosaic.version = 11 : i64} {
  func.func @_layernorm_kernel(%arg0: i32, %arg1: memref<8x128xf32, #tpu.memory_space<vmem>>, %arg2: memref<1x128xf32, #tpu.memory_space<vmem>>, %arg3: memref<1x128xf32, #tpu.memory_space<vmem>>, %arg4: memref<8x128xf32, #tpu.memory_space<vmem>>) attributes {dimension_semantics = [#tpu.dimension_semantics<parallel>], iteration_bounds = array<i64: 2>, scalar_prefetch = 0 : i64, scratch_operands = 0 : i64, tpu.core_type = #tpu.core_type<tc>, window_params = [{transform_indices = @transform_0, window_bounds = array<i64: 8, 128>}, {pipeline_mode = #tpu.pipeline_mode<synchronous>, transform_indices = @transform_1, window_bounds = array<i64: 1, 128>}, {pipeline_mode = #tpu.pipeline_mode<synchronous>, transform_indices = @transform_2, window_bounds = array<i64: 1, 128>}, {transform_indices = @transform_3, window_bounds = array<i64: 8, 128>}]} {
    %c0 = arith.constant 0 : index
    %c0_0 = arith.constant 0 : index
    %0 = vector.load %arg1[%c0, %c0_0] : memref<8x128xf32, #tpu.memory_space<vmem>>, vector<8x128xf32>
    %cst = arith.constant dense<0.000000e+00> : vector<8xf32>
    %1 = vector.multi_reduction <add>, %0, %cst [1] : vector<8x128xf32> to vector<8xf32>
    %2 = vector.shape_cast %1 : vector<8xf32> to vector<8x1xf32>
    %cst_1 = arith.constant 7.812500e-03 : f32
    %3 = vector.broadcast %cst_1 : f32 to vector<8x1xf32>
    %4 = arith.mulf %2, %3 : vector<8x1xf32>
    %5 = vector.broadcast %4 : vector<8x1xf32> to vector<8x128xf32>
    %6 = arith.subf %0, %5 : vector<8x128xf32>
    %7 = vector.broadcast %4 : vector<8x1xf32> to vector<8x128xf32>
    %8 = arith.subf %0, %7 : vector<8x128xf32>
    %9 = arith.mulf %6, %8 : vector<8x128xf32>
    %cst_2 = arith.constant dense<0.000000e+00> : vector<8xf32>
    %10 = vector.multi_reduction <add>, %9, %cst_2 [1] : vector<8x128xf32> to vector<8xf32>
    %11 = vector.shape_cast %10 : vector<8xf32> to vector<8x1xf32>
    %cst_3 = arith.constant 7.812500e-03 : f32
    %12 = vector.broadcast %cst_3 : f32 to vector<8x1xf32>
    %13 = arith.mulf %11, %12 : vector<8x1xf32>
    %cst_4 = arith.constant 9.99999974E-6 : f32
    %14 = vector.broadcast %cst_4 : f32 to vector<8x1xf32>
    %15 = arith.addf %13, %14 : vector<8x1xf32>
    %16 = math.rsqrt %15 : vector<8x1xf32>
    %17 = vector.broadcast %4 : vector<8x1xf32> to vector<8x128xf32>
    %18 = arith.subf %0, %17 : vector<8x128xf32>
    %19 = vector.broadcast %16 : vector<8x1xf32> to vector<8x128xf32>
    %20 = arith.mulf %18, %19 : vector<8x128xf32>
    %c0_5 = arith.constant 0 : index
    %c0_6 = arith.constant 0 : index
    %21 = vector.load %arg2[%c0_5, %c0_6] : memref<1x128xf32, #tpu.memory_space<vmem>>, vector<1x128xf32>
    %22 = vector.broadcast %21 : vector<1x128xf32> to vector<8x128xf32>
    %23 = arith.mulf %20, %22 : vector<8x128xf32>
    %c0_7 = arith.constant 0 : index
    %c0_8 = arith.constant 0 : index
    %24 = vector.load %arg3[%c0_7, %c0_8] : memref<1x128xf32, #tpu.memory_space<vmem>>, vector<1x128xf32>
    %25 = vector.broadcast %24 : vector<1x128xf32> to vector<8x128xf32>
    %26 = arith.addf %23, %25 : vector<8x128xf32>
    %c0_9 = arith.constant 0 : index
    %c0_10 = arith.constant 0 : index
    %27 = vector.load %arg4[%c0_9, %c0_10] : memref<8x128xf32, #tpu.memory_space<vmem>>, vector<8x128xf32>
    tpu.vector_store %arg4[%c0_9, %c0_10], %26 {strides = array<i32>} : memref<8x128xf32, #tpu.memory_space<vmem>>, vector<8x128xf32>,
    return
  }
  func.func @transform_0(%arg0: i32) -> (i32, i32) {
    %c0_i32 = arith.constant 0 : i32
    %c0_i32_0 = arith.constant 0 : i32
    return %arg0, %c0_i32 : i32, i32
  }
  func.func @transform_1(%arg0: i32) -> (i32, i32) {
    %c0_i32 = arith.constant 0 : i32
    %c0_i32_0 = arith.constant 0 : i32
    %c0_i32_1 = arith.constant 0 : i32
    return %c0_i32, %c0_i32_0 : i32, i32
  }
  func.func @transform_2(%arg0: i32) -> (i32, i32) {
    %c0_i32 = arith.constant 0 : i32
    %c0_i32_0 = arith.constant 0 : i32
    %c0_i32_1 = arith.constant 0 : i32
    return %c0_i32, %c0_i32_0 : i32, i32
  }
  func.func @transform_3(%arg0: i32) -> (i32, i32) {
    %c0_i32 = arith.constant 0 : i32
    %c0_i32_0 = arith.constant 0 : i32
    return %arg0, %c0_i32 : i32, i32
  }
}

</mosaic_0001>

<bundles_post_ra>
// kernel: _layernorm_2d.1
= control target key start
LH: loop header
LB: loop body
LE: loop exit
PB: predicated region body
PF: predicated region fallthrough
CT: control target
= control target key end

     0   :  { %8 = vsyncpa [#allocation3], 0  ;;  %s648_s0 = inlined_call_operand.hbm [shape: f32[16,128], index: 0, kind: input, shape index: {}]   ;;  %s649_s1 = inlined_call_operand.vmem [shape: f32[1,128], index: 1, kind: input, shape index: {}]   ;;  %s650_s2 = inlined_call_operand.vmem [shape: f32[1,128], index: 2, kind: input, shape index: {}]   ;;  %s651_s3 = inlined_call_operand.hbm [shape: f32[16,128], index: 3, kind: output, shape index: {}]  }
   0x1   :  { %10 = vsyncpa [#allocation3 + $0x1], 0 }
   0x2   :  { %11 = vsyncpa [#allocation4], 0 }
   0x3   :  { %13 = vsyncpa [#allocation4 + $0x1], 0  ;;  %s481_s12 = smov 0   ;;  %s483_s13 = smov 0  }
   0x4   :  { %s485_s14 = smov 0   ;;  %s487_s15 = smov 0  }
   0x5 LB: > { %s502_s16 = sadd.s32 4294967295, %s457_s15   ;;  %s299_s17 = sadd.s32 4294967294, %s457_s15   ;;  %s457_s15 = sphi %s487_s15, %s666_s15   ;;  %s453_s14 = sphi %s485_s14, %s665_s14   ;;  %s449_s13 = sphi %s483_s13, %s664_s13   ;;  %s445_s12 = sphi %s481_s12, %s663_s12  }
   0x6   : > { %s506_s18 = sadd.s32 1, %s457_s15   ;;  %s26_s19 = sadd.s32 1, %s453_s14 }
   0x7   : > { %s23_s20 = ssub.s32 %s457_s15, %s506_s18  ;;  %p33_p0 = scmp.ne.s32.totalorder %s453_s14, %s449_s13 }
   0x8   : > { %p24_p1 = scmp.eq.s32.totalorder %s23_s20, 0  ;;  %p34_p2 = scmp.eq.s32.totalorder %s457_s15, 0 }
   0x9   : > { %p39_p3 = scmp.ne.s32.totalorder %s449_s13, %s445_s12  ;;  %p40_p4 = scmp.eq.s32.totalorder %s502_s16, 0 }
   0xa   : > { %s518_s21 = scalar_select %p24_p1, %s453_s14, %s26_s19  }
   0xb   : > { %p520_p5 = por %p34_p2, %p33_p0  ;;  %p524_p6 = por %p40_p4, %p39_p3 }
   0xc   : > { %p105_p7 = scmp.eq.s32.totalorder %s502_s16, 1  ;;  %p111_p8 = scmp.eq.s32.totalorder %s299_s17, 1 }
   0xd   : > { %p325_p10 = scmp.lt.s32.totalorder %s457_s15, 2  ;;  %s137_s26 = sand.u32 1, %s453_s14  }
   0xe   : > { %p531_p11 = por %p105_p7, %p33_p0  ;;  %p535_p12 = por %p111_p8, %p39_p3 }
   0xf   : > { %s303_s27 = sshll.u32 %s457_s15, 7  ;;  %s302_s28 = sshll.u32 %s137_s26, 3 }
  0x10   : > { %s655_s24 = scalar_select %p531_p11, 1, 0 }
  0x11   : > { %s656_s25 = scalar_select %p535_p12, 1, 0 }
  0x12   : > { %s544_s4 = scalar_lea.hbm %s648_s0, %s303_s27  ;;  %s141_s5 = scalar_lea.vmem [#allocation2], %s302_s28 }
  0x13   : > { %s148_s6 = sshll.u32 %s141_s5, 4  ;;  %p548_p13 = pnand %p325_p10, %p520_p5  ;;  %s552_s6 = int_to_ptr.vmem [resolvable:$true] %s148_s6 }
  0x14   : > { %s138_s8 = scalar_lea.sflag [#allocation3], %s137_s26  ;;  %s361_s9 = scalar_lea.hbm %s544_s4, 128 }
  0x15   : > { %p362_p2 = scmp.ne.s32.totalorder %s544_s4, %s361_s9  ;;  %p363_p3 = pneg %p548_p13 }
  0x16   : > { %s366_s17 = scalar_lea.hbm %s648_s0, 256  ;;  %p367_p5 = scmp.lt.u32.totalorder %s544_s4, %s648_s0 }
  0x17   : > { %p364_p4 = pnand %p363_p3, %p362_p2  ;;  %p368_p8 = scmp.lt.u32.totalorder %s366_s17, %s361_s9 }
  0x18   : > { %p370_p9 = scmp.lt.u32.totalorder %s361_s9, %s544_s4 }
  0x19   : > { %p365_p7 = pneg %p364_p4  ;;  %p369_p10 = por %p368_p8, %p367_p5 }
  0x1b   : > { %p371_p0 = por %p370_p9, %p369_p10 }
  0x1d   : > { %p372_p1 = pnand %p371_p0, %p365_p7 }
  0x1f   : > { %375 = shalt.err (!%p372_p1)
}
  0x20   : > { %s376_s22 = scalar_lea.vmem %s552_s6, 128  ;;  %s459_s26 = smov [#allocation2]  }
  0x21   : > { %p377_p2 = scmp.ne.s32.totalorder %s552_s6, %s376_s22  ;;  %s381_s27 = sshll.u32 %s459_s26, 4  ;;  %s382_s27 = int_to_ptr.vmem [resolvable:$false] %s381_s27 }
  0x22   : > { %s383_s28 = scalar_lea.vmem %s382_s27, 256  ;;  %p384_p11 = scmp.lt.s32.totalorder %s552_s6, %s382_s27 }
  0x23   : > { %p379_p4 = pnand %p377_p2, %p363_p3  ;;  %p385_p5 = scmp.lt.s32.totalorder %s383_s28, %s376_s22 }
  0x25   : > { %p380_p12 = pneg %p379_p4  ;;  %p386_p8 = por %p385_p5, %p384_p11 }
  0x27   : > { %p387_p9 = pnand %p386_p8, %p380_p12 }
  0x29   : > { %390 = shalt.err (!%p387_p9)
}
  0x2a   : > { %320 = dma.hbm_to_vmem [thread:$0]  (!%p548_p13), %s544_s4, 128, %s552_s6, %s138_s8  }
  0x2b   : > { %p658_p0 = scmp.lt.s32.totalorder %s457_s15, 3  ;;  %p659_p1 = scmp.ge.s32.totalorder %s457_s15, 1 }
  0x2d   : > { %p154_p3 = pnand %p659_p1, %p658_p0 }
  0x2e   : > { %s586_s29 = sand.u32 (!%p154_p3), 1, %s449_s13  }
  0x2f   : > { %157 = sbr.rel (%p154_p3) target bundleno = 381 (0x17d), region = 32  ;;  %s305_s30 = sshll.u32 (!%p154_p3), %s586_s29, 3 }
  0x30   : > { %s160_s5 = scalar_lea.sflag (!%p154_p3), [#allocation3], %s586_s29  ;;  %s163_s9 = scalar_lea.vmem (!%p154_p3), [#allocation2], %s305_s30 }
  0x36   : > { %436 = dma.done.wait (%p524_p6), %s160_s5, 128  }
  0x37   : > { %438 = vsyncadd (%p524_p6), %s160_s5, 4294967168  ;;  %v186_v0 = vld [vmem:[%s163_s9] sm:$0xff]  ;;  %s310_s8 = sshll.u32 %s502_s16, 7  ;;  %s185_s10 = scalar_lea.vmem [#allocation5], %s305_s30 }
  0x38   : > { %187 = vadd.xlane.f32.xlu0 %v186_v0  ;;  %v307_v9 = vld [vmem:[%s649_s1] ss:$0 sm:$0xff]  ;;  %s229_s11 = sshll.u32 %s185_s10, 4  ;;  %s604_s20 = scalar_lea.hbm %s651_s3, %s310_s8  ;;  %s606_s11 = int_to_ptr.vmem [resolvable:$true] %s229_s11 }
  0x39   : > { %v308_v11 = vld [vmem:[%s650_s2] ss:$0 sm:$0xff]  ;;  %s216_s22 = scalar_lea.sflag [#allocation4], %s586_s29  ;;  %s391_s26 = scalar_lea.vmem %s606_s11, 128 }
  0x3a   : > { %p392_p6 = scmp.ne.s32.totalorder %s606_s11, %s391_s26  ;;  %p660_p11 = scmp.ne.s32.totalorder %s655_s24, 0 }
  0x3b   : > { %s460_s16 = smov [#allocation5]  }
  0x3c   : > { %p393_p12 = pnand %p392_p6, %p660_p11  ;;  %s395_s27 = sshll.u32 %s460_s16, 4  ;;  %s396_s27 = int_to_ptr.vmem [resolvable:$false] %s395_s27 }
  0x3d   : > { %s397_s28 = scalar_lea.vmem %s396_s27, 256  ;;  %p398_p7 = scmp.lt.s32.totalorder %s606_s11, %s396_s27 }
  0x3e   : > { %p394_p13 = pneg %p393_p12  ;;  %p399_p10 = scmp.lt.s32.totalorder %s397_s28, %s391_s26 }
  0x40   : > { %p400_p2 = por %p399_p10, %p398_p7 }
  0x42   : > { %p401_p4 = pnand %p400_p2, %p394_p13 }
  0xc5   : > { %v188_v1 = vpop.xlane.xlu0 %187 }
  0xc6   : > { %v189_v2 = vmul.f32 0.0078125, %v188_v1 }
  0xc8   : > { %v190_v3 = vsub.f32 %v186_v0, %v189_v2 }
  0xca   : > { %v191_v4 = vmul.f32 %v190_v3, %v190_v3 }
  0xcc   : > { %192 = vadd.xlane.f32.xlu0 %v191_v4 }
 0x159   : > { %v193_v5 = vpop.xlane.xlu0 %192 }
 0x15a   : > { %v194_v6 = vmul.f32 0.0078125, %v193_v5 }
 0x15c   : > { %v195_v7 = vadd.f32 1e-05, %v194_v6 }
 0x15e   : > { %359 = vrsqrt.f32 %v195_v7 }
 0x168   : > { %v360_v8 = vpop.eup %359 }
 0x169   : > { %v197_v10 = vmul.f32 %v360_v8, %v190_v3 }
 0x16b   : > { %v205_v12 = vmul.f32 %v307_v9, %v197_v10 }
 0x16d   : > { %v213_v13 = vadd.f32 %v308_v11, %v205_v12 }
 0x16f   : > { %214 = vst [vmem:[%s185_s10] sm:$0xff] %v213_v13 }
 0x170   : > { %404 = shalt.err (!%p401_p4)
}
 0x171   : > { %s405_s29 = scalar_lea.hbm %s604_s20, 128  ;;  %s409_s9 = scalar_lea.hbm %s651_s3, 256 }
 0x172   : > { %p406_p5 = scmp.ne.s32.totalorder %s604_s20, %s405_s29  ;;  %p410_p0 = scmp.lt.u32.totalorder %s604_s20, %s651_s3 }
 0x173   : > { %p411_p1 = scmp.lt.u32.totalorder %s409_s9, %s405_s29  ;;  %p413_p6 = scmp.lt.u32.totalorder %s405_s29, %s604_s20 }
 0x174   : > { %p407_p8 = pnand %p406_p5, %p660_p11 }
 0x175   : > { %p412_p3 = por %p411_p1, %p410_p0 }
 0x176   : > { %p408_p9 = pneg %p407_p8 }
 0x177   : > { %p414_p12 = por %p413_p6, %p412_p3 }
 0x179   : > { %p415_p13 = pnand %p414_p12, %p408_p9 }
 0x17b   : > { %418 = shalt.err (!%p415_p13)
}
 0x17c   : > { %315 = dma.vmem_to_hbm [thread:$0]  (%p660_p11), %s606_s11, 128, %s604_s20, %s216_s22  }
 0x17d PF: > { %s241_s23 = sand.u32 1, %s445_s12   ;;  %p661_p7 = scmp.ne.s32.totalorder %s656_s25, 0 }
 0x17e   : > { %p662_p10 = scmp.ge.s32.totalorder %s457_s15, 2  ;;  %s242_s7 = scalar_lea.sflag [#allocation4], %s241_s23 }
 0x180   : > { %p322_p2 = pnand %p662_p10, %p661_p7 }
 0x182   : > { %440 = dma.done.wait (!%p322_p2), %s242_s7, 128  }
 0x183   : > { %442 = vsyncadd (!%p322_p2), %s242_s7, 4294967168  ;;  %p16_p4 = scmp.ge.s32.totalorder %s506_s18, 4   ;;  %s663_s12 = smov %s449_s13 }
 0x184   : > { %s664_s13 = smov %s453_s14  ;;  %s665_s14 = smov %s518_s21 }
 0x185   : > { %s666_s15 = smov %s506_s18  ;;  %18 = sbr.rel (!%p16_p4) target bundleno = 5 (0x5), region = 77 }
 0x18c   :  { %247 = vsyncpa [#allocation3], 1 }
 0x18d   :  { %249 = vsyncpa [#allocation3 + $0x1], 1 }
 0x18e   :  { %250 = vsyncpa [#allocation4], 1 }
 0x18f   :  { %252 = vsyncpa [#allocation4 + $0x1], 1 }

</bundles_post_ra>
